<compile_context>
chip_gen: v6e
topology: v6e:2x2x1
jax: 0.10.0
libtpu: 0.0.40
codegen_flags: <defaults>
</compile_context>

<pallas_src>
import functools

import jax
import jax.numpy as jnp
from jax.experimental import pallas as pl
from jax.experimental.pallas import tpu as pltpu


def _round_up(n, m):
    return ((n + m - 1) // m) * m


def _vmem_limits():
    """Generation-aware scoped-VMEM limit and tile budget."""
    cap = 64 * 1024 * 1024  # conservative fallback (v7x per-TC size)
    try:
        info = pltpu.get_tpu_info()
        cap = int(getattr(info, "vmem_capacity_bytes", cap))
    except Exception:
        pass
    # ~100 MiB on 128 MiB parts (v5e/v6e), ~51 MiB on 64 MiB v7x; leave
    # headroom for Mosaic-internal scratch.
    limit = min(int(cap * 0.8), 100 * 1024 * 1024)
    limit = max(limit, 32 * 1024 * 1024)
    budget = int(limit * 0.85)
    return limit, budget


# ----------------------------------------------------------------------------
# Shared LayerNorm epilogue (masked statistics when the feature axis is padded)
# ----------------------------------------------------------------------------
def _layernorm_rows(y, g, b, d_model, eps):
    d_pad = y.shape[-1]
    if d_pad == d_model:
        mean = jnp.mean(y, axis=-1, keepdims=True)
        diff = y - mean
        var = jnp.mean(diff * diff, axis=-1, keepdims=True)
    else:
        # Padded lanes of `y` are exactly 0 (zero-padded x, W2 columns), so the
        # sum is already correct; only the variance needs a mask.
        inv_d = 1.0 / d_model
        lane = jax.lax.broadcasted_iota(jnp.int32, y.shape, y.ndim - 1)
        mask = lane < d_model
        mean = jnp.sum(y, axis=-1, keepdims=True) * inv_d
        diff = jnp.where(mask, y - mean, 0.0)
        var = jnp.sum(diff * diff, axis=-1, keepdims=True) * inv_d
    # gamma/beta are zero in padded lanes, so padded output lanes stay 0.
    return (y - mean) * jax.lax.rsqrt(var + eps) * g + b


# ----------------------------------------------------------------------------
# Kernel A: weights fully VMEM-resident (1-D grid over row tiles)
# ----------------------------------------------------------------------------
def _ffn_resident_kernel(x_ref, w1_ref, w2_ref, g_ref, b_ref, o_ref,
                         *, d_model, eps):
    # x_ref:  (tm, d_pad)            token tile
    # w1_ref: (d_pad, d_ff_pad)      full W1 (constant block -> DMA'd once)
    # w2_ref: (d_ff_pad, d_pad)      full W2 (constant block -> DMA'd once)
    # g_ref/b_ref: (1, d_pad) f32    LayerNorm affine (zero-padded)
    x = x_ref[...]
    h = jnp.dot(x, w1_ref[...], preferred_element_type=jnp.float32)
    h = jnp.maximum(h, 0.0)
    y = jnp.dot(h.astype(w2_ref.dtype), w2_ref[...],
                preferred_element_type=jnp.float32)
    y = y + x.astype(jnp.float32)                       # residual
    g = g_ref[...].astype(jnp.float32)
    b = b_ref[...].astype(jnp.float32)
    o_ref[...] = _layernorm_rows(y, g, b, d_model, eps).astype(o_ref.dtype)


# ----------------------------------------------------------------------------
# Kernel B: streamed weights (2-D grid; d_ff is the reduction axis, last)
# ----------------------------------------------------------------------------
def _ffn_streamed_kernel(x_ref, w1_ref, w2_ref, g_ref, b_ref, o_ref, acc_ref,
                         *, d_model, eps):
    # acc_ref: (tm, d_pad) f32 accumulator, seeded with the residual.
    k = pl.program_id(1)

    @pl.when(k == 0)
    def _init():
        acc_ref[...] = x_ref[...].astype(jnp.float32)

    # ReLU is elementwise, so it commutes with the d_ff split: each chunk
    # contributes relu(x @ W1_k) @ W2_k independently.
    h = jnp.dot(x_ref[...], w1_ref[...], preferred_element_type=jnp.float32)
    h = jnp.maximum(h, 0.0)
    acc_ref[...] += jnp.dot(h.astype(w2_ref.dtype), w2_ref[...],
                            preferred_element_type=jnp.float32)

    @pl.when(k == pl.num_programs(1) - 1)
    def _finalize():
        g = g_ref[...].astype(jnp.float32)
        b = b_ref[...].astype(jnp.float32)
        o_ref[...] = _layernorm_rows(acc_ref[...], g, b, d_model,
                                     eps).astype(o_ref.dtype)


# ----------------------------------------------------------------------------
# Tile planning
# ----------------------------------------------------------------------------
def _plan(rows, d_model, d_ff, x_itemsize, w_itemsize, budget):
    sub = 8 * max(1, 4 // x_itemsize)           # sublane packing: 8/16/32
    d_pad = _round_up(d_model, 128)
    d_ff_pad = _round_up(d_ff, 128)
    rows_cap = _round_up(rows, sub)

    def tm_candidates():
        limit = min(rows_cap, 1024)
        cands = []
        for t in (1024, 768, 512, 384, 256, 192, 128, 96, 64, 32, 16, 8):
            c = _round_up(min(t, limit), sub)
            if c <= limit and c not in cands:
                cands.append(c)
        return cands                             # descending

    def resident_bytes(tm_):
        return (4 * d_pad * d_ff_pad * w_itemsize      # W1+W2, double-buffered
                + 4 * tm_ * d_pad * x_itemsize         # x + out tiles, 2 bufs
                + 2 * tm_ * d_ff_pad * 4               # h f32 + cast copy
                + 2 * tm_ * d_pad * 4)                 # y f32 + norm temp

    def streamed_bytes(tm_, tk_):
        return (4 * tm_ * d_pad * x_itemsize           # x + out tiles
                + 2 * d_pad * tk_ * w_itemsize         # W1 chunk, 2 bufs
                + 2 * tk_ * d_pad * w_itemsize         # W2 chunk, 2 bufs
                + tm_ * d_pad * 4                      # f32 accumulator
                + 2 * tm_ * tk_ * 4)                   # h intermediates

    # Preferred: fully resident weights -> each weight is DMA'd exactly once.
    for tm_ in tm_candidates():
        if resident_bytes(tm_) <= budget:
            return dict(mode="resident", tm=tm_, tk=d_ff_pad,
                        d_pad=d_pad, d_ff_pad=d_ff_pad)

    # Fallback: stream d_ff chunks.  Keep tk large; shrink tm first but not
    # below the ~256-row roofline floor; shrink tk only as a last resort.
    tk_cands = [t for t in range(d_ff_pad, 0, -128) if d_ff_pad % t == 0]
    tk_cands = [t for t in tk_cands if t <= 1024] or [128]
    tm_floor = _round_up(min(rows_cap, 256), sub)
    for tk_ in tk_cands:
        for tm_ in tm_candidates():
            if tm_ < tm_floor:
                break
            if streamed_bytes(tm_, tk_) <= budget:
                return dict(mode="streamed", tm=tm_, tk=tk_,
                            d_pad=d_pad, d_ff_pad=d_ff_pad)
    for tm_ in tm_candidates():                  # last resort: tiny tiles
        if streamed_bytes(tm_, 128) <= budget:
            return dict(mode="streamed", tm=tm_, tk=128,
                        d_pad=d_pad, d_ff_pad=d_ff_pad)
    return dict(mode="streamed", tm=sub, tk=128, d_pad=d_pad,
                d_ff_pad=d_ff_pad)


# ----------------------------------------------------------------------------
# One-time parameter preparation (padding / casting hoisted out of the
# per-call path).
# ----------------------------------------------------------------------------
def prepare_ffn_params(w1, w2, gamma, beta, *, compute_dtype=None):
    """w1: [d_model, d_ff] (matmul-ready transpose of nn.Linear.weight),
       w2: [d_ff, d_model], gamma/beta: [d_model]."""
    d_model, d_ff = w1.shape
    d_pad = _round_up(d_model, 128)
    d_ff_pad = _round_up(d_ff, 128)
    wdt = compute_dtype if compute_dtype is not None else w1.dtype
    w1p = jnp.pad(w1.astype(wdt), ((0, d_pad - d_model), (0, d_ff_pad - d_ff)))
    w2p = jnp.pad(w2.astype(wdt), ((0, d_ff_pad - d_ff), (0, d_pad - d_model)))
    g2d = jnp.pad(gamma.reshape(1, d_model).astype(jnp.float32),
                  ((0, 0), (0, d_pad - d_model)))
    b2d = jnp.pad(beta.reshape(1, d_model).astype(jnp.float32),
                  ((0, 0), (0, d_pad - d_model)))
    return {"w1": w1p, "w2": w2p, "gamma": g2d, "beta": b2d,
            "d_model": d_model, "d_ff": d_ff}


# ----------------------------------------------------------------------------
# Forward
# ----------------------------------------------------------------------------
def poswise_ffn(x, params, *, eps=1e-5, compute_dtype=None, interpret=False):
    """x: [batch, seq, d_model]; params from prepare_ffn_params."""
    w1p, w2p = params["w1"], params["w2"]
    g2d, b2d = params["gamma"], params["beta"]
    d_model, d_ff = params["d_model"], params["d_ff"]

    B, S, dm = x.shape
    assert dm == d_model
    rows = B * S

    if compute_dtype is not None and x.dtype != compute_dtype:
        x = x.astype(compute_dtype)

    x_item = jnp.dtype(x.dtype).itemsize
    w_item = jnp.dtype(w1p.dtype).itemsize

    vmem_limit, budget = _vmem_limits()
    plan = _plan(rows, d_model, d_ff, x_item, w_item, budget)
    tm, tk = plan["tm"], plan["tk"]
    d_pad, d_ff_pad = plan["d_pad"], plan["d_ff_pad"]
    resident = plan["mode"] == "resident"

    rows_pad = _round_up(rows, tm)
    x2d = x.reshape(rows, d_model)
    if rows_pad != rows or d_pad != d_model:
        x2d = jnp.pad(x2d, ((0, rows_pad - rows), (0, d_pad - d_model)))

    n_row_tiles = rows_pad // tm
    weight_bytes = (w1p.size * w_item + w2p.size * w_item)
    weight_reads = 1 if resident else n_row_tiles
    cost = pl.CostEstimate(
        flops=4 * rows_pad * d_pad * d_ff_pad,               # two matmuls
        transcendentals=rows_pad,                            # rsqrt per row
        bytes_accessed=(2 * rows_pad * d_pad * x_item        # x read + out write
                        + weight_reads * weight_bytes        # actual weight traffic
                        + 2 * d_pad * 4),                    # gamma/beta
    )

    if resident:
        kernel = functools.partial(_ffn_resident_kernel, d_model=d_model, eps=eps)
        grid_spec = pltpu.PrefetchScalarGridSpec(
            num_scalar_prefetch=0,
            grid=(n_row_tiles,),
            in_specs=[
                pl.BlockSpec((tm, d_pad), lambda i: (i, 0)),          # x tile
                pl.BlockSpec((d_pad, d_ff_pad), lambda i: (0, 0)),    # W1 (resident)
                pl.BlockSpec((d_ff_pad, d_pad), lambda i: (0, 0)),    # W2 (resident)
                pl.BlockSpec((1, d_pad), lambda i: (0, 0)),           # gamma
                pl.BlockSpec((1, d_pad), lambda i: (0, 0)),           # beta
            ],
            out_specs=pl.BlockSpec((tm, d_pad), lambda i: (i, 0)),
        )
        dims = ("parallel",)
    else:
        kernel = functools.partial(_ffn_streamed_kernel, d_model=d_model, eps=eps)
        grid_spec = pltpu.PrefetchScalarGridSpec(
            num_scalar_prefetch=0,
            grid=(n_row_tiles, d_ff_pad // tk),
            in_specs=[
                pl.BlockSpec((tm, d_pad), lambda i, k: (i, 0)),       # x tile
                pl.BlockSpec((d_pad, tk), lambda i, k: (0, k)),       # W1 chunk
                pl.BlockSpec((tk, d_pad), lambda i, k: (k, 0)),       # W2 chunk
                pl.BlockSpec((1, d_pad), lambda i, k: (0, 0)),        # gamma
                pl.BlockSpec((1, d_pad), lambda i, k: (0, 0)),        # beta
            ],
            out_specs=pl.BlockSpec((tm, d_pad), lambda i, k: (i, 0)),
            scratch_shapes=[pltpu.VMEM((tm, d_pad), jnp.float32)],
        )
        dims = ("parallel", "arbitrary")

    out2d = pl.pallas_call(
        kernel,
        out_shape=jax.ShapeDtypeStruct((rows_pad, d_pad), x.dtype),
        grid_spec=grid_spec,
        compiler_params=pltpu.CompilerParams(
            dimension_semantics=dims,
            vmem_limit_bytes=vmem_limit,
        ),
        cost_estimate=cost,
        interpret=interpret,
    )(x2d, w1p, w2p, g2d, b2d)

    if rows_pad != rows or d_pad != d_model:
        out2d = out2d[:rows, :d_model]
    return out2d.reshape(B, S, d_model)


# ----------------------------------------------------------------------------
# Reference & demo
# ----------------------------------------------------------------------------
def _reference(x, w1, w2, gamma, beta, eps=1e-5):
    h = jnp.maximum(x @ w1, 0.0)
    y = h @ w2 + x
    mean = jnp.mean(y, axis=-1, keepdims=True)
    var = jnp.mean((y - mean) ** 2, axis=-1, keepdims=True)
    return (y - mean) / jnp.sqrt(var + eps) * gamma + beta


if __name__ == "__main__":
    # Small shapes consistent with the module: [batch, seq, d_model]
    batch, seq, d_model, d_ff = 2, 8, 32, 64

    key = jax.random.PRNGKey(0)
    kx, k1, k2 = jax.random.split(key, 3)

    x = jax.random.normal(kx, (batch, seq, d_model), dtype=jnp.float32)

    # nn.Linear(d_model, d_ff, bias=False).weight is (d_ff, d_model); we keep
    # the transposed (d_model, d_ff) matmul-ready form.
    w1 = jax.random.normal(k1, (d_model, d_ff), dtype=jnp.float32) * (1.0 / d_model ** 0.5)
    w2 = jax.random.normal(k2, (d_ff, d_model), dtype=jnp.float32) * (1.0 / d_ff ** 0.5)
    gamma = jnp.ones((d_model,), dtype=jnp.float32)    # LayerNorm weight init
    beta = jnp.zeros((d_model,), dtype=jnp.float32)    # LayerNorm bias init

    # Weight padding/casting hoisted out of the per-call path (prep once).
    # For production bf16 MXU operands: prepare_ffn_params(..., compute_dtype=jnp.bfloat16)
    # and poswise_ffn(..., compute_dtype=jnp.bfloat16); kept f32 here for the
    # tight correctness check.
    params = prepare_ffn_params(w1, w2, gamma, beta)

    out = poswise_ffn(x, params)
    out = jax.block_until_ready(out)

    ref = _reference(x, w1, w2, gamma, beta)
    assert out.shape == (batch, seq, d_model)
    assert jnp.allclose(out, ref, atol=1e-4, rtol=1e-4), "mismatch vs reference"

    print("KERNEL_OK")
</pallas_src>

<mosaic_0001>
module attributes {stable_mosaic.version = 11 : i64} {
  func.func @_ffn_resident_kernel(%arg0: i32, %arg1: memref<16x128xf32, #tpu.memory_space<vmem>>, %arg2: memref<128x128xf32, #tpu.memory_space<vmem>>, %arg3: memref<128x128xf32, #tpu.memory_space<vmem>>, %arg4: memref<1x128xf32, #tpu.memory_space<vmem>>, %arg5: memref<1x128xf32, #tpu.memory_space<vmem>>, %arg6: memref<16x128xf32, #tpu.memory_space<vmem>>) attributes {dimension_semantics = [#tpu.dimension_semantics<parallel>], iteration_bounds = array<i64: 1>, scalar_prefetch = 0 : i64, scratch_operands = 0 : i64, tpu.core_type = #tpu.core_type<tc>, window_params = [{transform_indices = @transform_0, window_bounds = array<i64: 16, 128>}, {pipeline_mode = #tpu.pipeline_mode<synchronous>, transform_indices = @transform_1, window_bounds = array<i64: 128, 128>}, {pipeline_mode = #tpu.pipeline_mode<synchronous>, transform_indices = @transform_2, window_bounds = array<i64: 128, 128>}, {pipeline_mode = #tpu.pipeline_mode<synchronous>, transform_indices = @transform_3, window_bounds = array<i64: 1, 128>}, {pipeline_mode = #tpu.pipeline_mode<synchronous>, transform_indices = @transform_4, window_bounds = array<i64: 1, 128>}, {transform_indices = @transform_5, window_bounds = array<i64: 16, 128>}]} {
    %c0 = arith.constant 0 : index
    %c0_0 = arith.constant 0 : index
    %0 = vector.load %arg1[%c0, %c0_0] : memref<16x128xf32, #tpu.memory_space<vmem>>, vector<16x128xf32>
    %c0_1 = arith.constant 0 : index
    %c0_2 = arith.constant 0 : index
    %1 = vector.load %arg2[%c0_1, %c0_2] : memref<128x128xf32, #tpu.memory_space<vmem>>, vector<128x128xf32>
    %cst = arith.constant dense<0.000000e+00> : vector<16x128xf32>
    %2 = tpu.matmul %0, %1, %cst {dimension_numbers = #tpu.dot_dimension_numbers<[1], [0], [0], [1], [0, 0, 1, 1], [], []>} : vector<16x128xf32>, vector<128x128xf32>, vector<16x128xf32> -> vector<16x128xf32>
    %cst_3 = arith.constant 0.000000e+00 : f32
    %3 = vector.broadcast %cst_3 : f32 to vector<16x128xf32>
    %4 = arith.maximumf %2, %3 : vector<16x128xf32>
    %c0_4 = arith.constant 0 : index
    %c0_5 = arith.constant 0 : index
    %5 = vector.load %arg3[%c0_4, %c0_5] : memref<128x128xf32, #tpu.memory_space<vmem>>, vector<128x128xf32>
    %cst_6 = arith.constant dense<0.000000e+00> : vector<16x128xf32>
    %6 = tpu.matmul %4, %5, %cst_6 {dimension_numbers = #tpu.dot_dimension_numbers<[1], [0], [0], [1], [0, 0, 1, 1], [], []>} : vector<16x128xf32>, vector<128x128xf32>, vector<16x128xf32> -> vector<16x128xf32>
    %7 = arith.addf %6, %0 : vector<16x128xf32>
    %c0_7 = arith.constant 0 : index
    %c0_8 = arith.constant 0 : index
    %8 = vector.load %arg4[%c0_7, %c0_8] : memref<1x128xf32, #tpu.memory_space<vmem>>, vector<1x128xf32>
    %c0_9 = arith.constant 0 : index
    %c0_10 = arith.constant 0 : index
    %9 = vector.load %arg5[%c0_9, %c0_10] : memref<1x128xf32, #tpu.memory_space<vmem>>, vector<1x128xf32>
    %10 = tpu.iota {dimensions = array<i32: 1>} : vector<16x128xi32>
    %c32_i32 = arith.constant 32 : i32
    %11 = vector.broadcast %c32_i32 : i32 to vector<16x128xi32>
    %12 = arith.cmpi slt, %10, %11 : vector<16x128xi32>
    %cst_11 = arith.constant dense<0.000000e+00> : vector<16xf32>
    %13 = vector.multi_reduction <add>, %7, %cst_11 [1] : vector<16x128xf32> to vector<16xf32>
    %14 = vector.shape_cast %13 : vector<16xf32> to vector<16x1xf32>
    %cst_12 = arith.constant 3.125000e-02 : f32
    %15 = vector.broadcast %cst_12 : f32 to vector<16x1xf32>
    %16 = arith.mulf %14, %15 : vector<16x1xf32>
    %17 = vector.broadcast %16 : vector<16x1xf32> to vector<16x128xf32>
    %18 = arith.subf %7, %17 : vector<16x128xf32>
    %cst_13 = arith.constant 0.000000e+00 : f32
    %19 = vector.broadcast %cst_13 : f32 to vector<16x128xf32>
    %20 = arith.select %12, %18, %19 : vector<16x128xi1>, vector<16x128xf32>
    %21 = arith.mulf %20, %20 : vector<16x128xf32>
    %cst_14 = arith.constant dense<0.000000e+00> : vector<16xf32>
    %22 = vector.multi_reduction <add>, %21, %cst_14 [1] : vector<16x128xf32> to vector<16xf32>
    %23 = vector.shape_cast %22 : vector<16xf32> to vector<16x1xf32>
    %cst_15 = arith.constant 3.125000e-02 : f32
    %24 = vector.broadcast %cst_15 : f32 to vector<16x1xf32>
    %25 = arith.mulf %23, %24 : vector<16x1xf32>
    %26 = vector.broadcast %16 : vector<16x1xf32> to vector<16x128xf32>
    %27 = arith.subf %7, %26 : vector<16x128xf32>
    %cst_16 = arith.constant 9.99999974E-6 : f32
    %28 = vector.broadcast %cst_16 : f32 to vector<16x1xf32>
    %29 = arith.addf %25, %28 : vector<16x1xf32>
    %30 = math.rsqrt %29 : vector<16x1xf32>
    %31 = vector.broadcast %30 : vector<16x1xf32> to vector<16x128xf32>
    %32 = arith.mulf %27, %31 : vector<16x128xf32>
    %33 = vector.broadcast %8 : vector<1x128xf32> to vector<16x128xf32>
    %34 = arith.mulf %32, %33 : vector<16x128xf32>
    %35 = vector.broadcast %9 : vector<1x128xf32> to vector<16x128xf32>
    %36 = arith.addf %34, %35 : vector<16x128xf32>
    %c0_17 = arith.constant 0 : index
    %c0_18 = arith.constant 0 : index
    %37 = vector.load %arg6[%c0_17, %c0_18] : memref<16x128xf32, #tpu.memory_space<vmem>>, vector<16x128xf32>
    tpu.vector_store %arg6[%c0_17, %c0_18], %36 {strides = array<i32>} : memref<16x128xf32, #tpu.memory_space<vmem>>, vector<16x128xf32>,
    return
  }
  func.func @transform_0(%arg0: i32) -> (i32, i32) {
    %c0_i32 = arith.constant 0 : i32
    %c0_i32_0 = arith.constant 0 : i32
    return %arg0, %c0_i32 : i32, i32
  }
  func.func @transform_1(%arg0: i32) -> (i32, i32) {
    %c0_i32 = arith.constant 0 : i32
    %c0_i32_0 = arith.constant 0 : i32
    %c0_i32_1 = arith.constant 0 : i32
    return %c0_i32, %c0_i32_0 : i32, i32
  }
  func.func @transform_2(%arg0: i32) -> (i32, i32) {
    %c0_i32 = arith.constant 0 : i32
    %c0_i32_0 = arith.constant 0 : i32
    %c0_i32_1 = arith.constant 0 : i32
    return %c0_i32, %c0_i32_0 : i32, i32
  }
  func.func @transform_3(%arg0: i32) -> (i32, i32) {
    %c0_i32 = arith.constant 0 : i32
    %c0_i32_0 = arith.constant 0 : i32
    %c0_i32_1 = arith.constant 0 : i32
    return %c0_i32, %c0_i32_0 : i32, i32
  }
  func.func @transform_4(%arg0: i32) -> (i32, i32) {
    %c0_i32 = arith.constant 0 : i32
    %c0_i32_0 = arith.constant 0 : i32
    %c0_i32_1 = arith.constant 0 : i32
    return %c0_i32, %c0_i32_0 : i32, i32
  }
  func.func @transform_5(%arg0: i32) -> (i32, i32) {
    %c0_i32 = arith.constant 0 : i32
    %c0_i32_0 = arith.constant 0 : i32
    return %arg0, %c0_i32 : i32, i32
  }
}

</mosaic_0001>

<bundles_post_ra>
// kernel: tpu_custom_call.1
= control target key start
LH: loop header
LB: loop body
LE: loop exit
PB: predicated region body
PF: predicated region fallthrough
CT: control target
= control target key end

     0   :  { %10 = vsyncpa [#allocation3], 0  ;;  %s583_s0 = inlined_call_operand.hbm [shape: f32[16,128], index: 0, kind: input, shape index: {}]   ;;  %s584_s1 = inlined_call_operand.hbm [shape: f32[128,128], index: 1, kind: input, shape index: {}]   ;;  %s585_s2 = inlined_call_operand.hbm [shape: f32[128,128], index: 2, kind: input, shape index: {}]   ;;  %s586_s3 = inlined_call_operand.vmem [shape: f32[1,128], index: 3, kind: input, shape index: {}]   ;;  %s587_s4 = inlined_call_operand.vmem [shape: f32[1,128], index: 4, kind: input, shape index: {}]   ;;  %s588_s5 = inlined_call_operand.hbm [shape: f32[16,128], index: 5, kind: output, shape index: {}]  }
   0x1   :  { %11 = vsyncpa [#allocation6], 0 }
   0x2   :  { %12 = vsyncpa [#allocation4], 0  ;;  %s517_s18 = smov [#allocation5]   ;;  %s518_s20 = smov [#allocation2]  }
   0x3   :  { %s30_s19 = sshll.u32 %s517_s18, 4  ;;  %s18_s21 = sshll.u32 %s518_s20, 4  ;;  %s31_s19 = int_to_ptr.vmem [resolvable:$true] %s30_s19  ;;  %s19_s21 = int_to_ptr.vmem [resolvable:$true] %s18_s21 }
   0x4   :  { %s439_s22 = scalar_lea.vmem %s31_s19, 2048  ;;  %p444_p1 = scmp.lt.s32.totalorder %s31_s19, %s31_s19 }
   0x5   :  { %p440_p0 = scmp.ne.s32.totalorder %s31_s19, %s439_s22  ;;  %p445_p2 = scmp.lt.s32.totalorder %s439_s22, %s439_s22 }
   0x7   :  { %p446_p3 = por %p445_p2, %p444_p1 }
   0x9   :  { %p447_p4 = pnand %p446_p3, %p440_p0 }
   0xb   :  { %450 = shalt.err (!%p447_p4)
}
   0xc   :  { %s519_s23 = smov 128   ;;  %s520_s24 = smov 8  }
   0xd   :  { %36 = dma.hbm_to_vmem [thread:$0]  %s584_s1, 2048, %s31_s19, [#allocation6], %s519_s23, %s519_s23, %s520_s24  }
   0xe   :  { %s459_s27 = scalar_lea.vmem %s19_s21, 256  ;;  %p464_p6 = scmp.lt.s32.totalorder %s19_s21, %s19_s21 }
   0xf   :  { %p460_p5 = scmp.ne.s32.totalorder %s19_s21, %s459_s27  ;;  %p465_p7 = scmp.lt.s32.totalorder %s459_s27, %s459_s27 }
  0x11   :  { %p466_p8 = por %p465_p7, %p464_p6 }
  0x13   :  { %p467_p9 = pnand %p466_p8, %p460_p5 }
  0x15   :  { %470 = shalt.err (!%p467_p9)
}
  0x16   :  { %24 = dma.hbm_to_vmem [thread:$0]  %s583_s0, 256, %s19_s21, [#allocation3], %s519_s23, %s519_s23, %s520_s24  }
  0x17   :  { %s521_s30 = smov [#allocation7]  }
  0x18   :  { %s42_s6 = sshll.u32 %s521_s30, 4  ;;  %s43_s6 = int_to_ptr.vmem [resolvable:$true] %s42_s6 }
  0x19   :  { %s479_s7 = scalar_lea.vmem %s43_s6, 2048  ;;  %p484_p11 = scmp.lt.s32.totalorder %s43_s6, %s43_s6 }
  0x1a   :  { %p480_p10 = scmp.ne.s32.totalorder %s43_s6, %s479_s7  ;;  %p485_p12 = scmp.lt.s32.totalorder %s479_s7, %s479_s7 }
  0x1c   :  { %p486_p13 = por %p485_p12, %p484_p11 }
  0x1e   :  { %p487_p0 = pnand %p486_p13, %p480_p10 }
  0x20   :  { %490 = shalt.err (!%p487_p0)
}
  0x21   :  { %48 = dma.hbm_to_vmem [thread:$0]  %s585_s2, 2048, %s43_s6, [#allocation6], %s519_s23, %s519_s23, %s520_s24  }
  0x22   :  { %511 = dma.done.wait [#allocation3], 256  }
  0x23   :  { %512 = vsyncadd [#allocation3], 4294967040 }
  0x24   :  { %513 = dma.done.wait [#allocation6], 4096  }
  0x25   :  { %514 = vsyncadd [#allocation6], 4294963200  ;;  %v79_v0 = vld [vmem:[#allocation5 + $0x78] sm:$0xff]  ;;  %v78_v1 = vld [vmem:[#allocation5 + $0x70] sm:$0xff]  ;;  %v250_v42 = vlaneseq  ;;  %s522_s11 = smov [#allocation8]  }
  0x26   :  { %351 = vmatprep.subr.mxu0 %v79_v0  ;;  %v77_v2 = vld [vmem:[#allocation5 + $0x68] sm:$0xff]  ;;  %v76_v3 = vld [vmem:[#allocation5 + $0x60] sm:$0xff]  ;;  %v172_v4 = vld [vmem:[#allocation7 + $0x78] sm:$0xff]  ;;  %s300_s12 = sshll.u32 %s522_s11, 4  ;;  %s301_s12 = int_to_ptr.vmem [resolvable:$true] %s300_s12 }
  0x27   :  { %352 = vmatpush3.msra.mxu0 %v79_v0  ;;  %v75_v5 = vld [vmem:[#allocation5 + $0x58] sm:$0xff]  ;;  %386 = vmatprep.subr.mxu1 %v172_v4  ;;  %v171_v6 = vld [vmem:[#allocation7 + $0x70] sm:$0xff]  ;;  %v170_v7 = vld [vmem:[#allocation7 + $0x68] sm:$0xff]  ;;  %v251_v43 = vand.u32 127, %v250_v42  ;;  %s491_s13 = scalar_lea.vmem %s301_s12, 256  ;;  %p496_p2 = scmp.lt.s32.totalorder %s301_s12, %s301_s12 }
  0x28   :  { %353 = vmatprep.subr.mxu0 %v78_v1  ;;  %387 = vmatpush3.msra.mxu1 %v172_v4  ;;  %v74_v8 = vld [vmem:[#allocation5 + $0x50] sm:$0xff]  ;;  %v169_v9 = vld [vmem:[#allocation7 + $0x60] sm:$0xff]  ;;  %v73_v10 = vld [vmem:[#allocation5 + $0x48] sm:$0xff]  ;;  %p492_p1 = scmp.ne.s32.totalorder %s301_s12, %s491_s13  ;;  %p497_p3 = scmp.lt.s32.totalorder %s491_s13, %s491_s13 }
  0x29   :  { %354 = vmatpush3.msra.mxu0 %v78_v1  ;;  %388 = vmatprep.subr.mxu1 %v171_v6  ;;  %v168_v11 = vld [vmem:[#allocation7 + $0x58] sm:$0xff]  ;;  %v72_v12 = vld [vmem:[#allocation5 + $0x40] sm:$0xff]  ;;  %v167_v13 = vld [vmem:[#allocation7 + $0x50] sm:$0xff]  ;;  %vm252_vm0 = vcmp.lt.s32.totalorder %v251_v43, 32 }
  0x2a   :  { %355 = vmatprep.subr.mxu0 %v77_v2  ;;  %389 = vmatpush3.msra.mxu1 %v171_v6  ;;  %v71_v14 = vld [vmem:[#allocation5 + $0x38] sm:$0xff]  ;;  %v166_v15 = vld [vmem:[#allocation7 + $0x48] sm:$0xff]  ;;  %v70_v16 = vld [vmem:[#allocation5 + $0x30] sm:$0xff]  ;;  %p498_p4 = por %p497_p3, %p496_p2 }
  0x2b   :  { %356 = vmatpush3.msra.mxu0 %v77_v2  ;;  %390 = vmatprep.subr.mxu1 %v170_v7  ;;  %v165_v17 = vld [vmem:[#allocation7 + $0x40] sm:$0xff]  ;;  %v69_v18 = vld [vmem:[#allocation5 + $0x28] sm:$0xff]  ;;  %v164_v19 = vld [vmem:[#allocation7 + $0x38] sm:$0xff] }
  0x2c   :  { %357 = vmatprep.subr.mxu0 %v76_v3  ;;  %391 = vmatpush3.msra.mxu1 %v170_v7  ;;  %v68_v20 = vld [vmem:[#allocation5 + $0x20] sm:$0xff]  ;;  %v163_v21 = vld [vmem:[#allocation7 + $0x30] sm:$0xff]  ;;  %v67_v22 = vld [vmem:[#allocation5 + $0x18] sm:$0xff]  ;;  %p499_p5 = pnand %p498_p4, %p492_p1 }
  0x2d   :  { %358 = vmatpush3.msra.mxu0 %v76_v3  ;;  %392 = vmatprep.subr.mxu1 %v169_v9  ;;  %v162_v23 = vld [vmem:[#allocation7 + $0x28] sm:$0xff]  ;;  %v66_v24 = vld [vmem:[#allocation5 + $0x10] sm:$0xff]  ;;  %v161_v25 = vld [vmem:[#allocation7 + $0x20] sm:$0xff] }
  0x2e   :  { %359 = vmatprep.subr.mxu0 %v75_v5  ;;  %393 = vmatpush3.msra.mxu1 %v169_v9  ;;  %v65_v26 = vld [vmem:[#allocation5 + $0x8] sm:$0xff]  ;;  %v160_v27 = vld [vmem:[#allocation7 + $0x18] sm:$0xff]  ;;  %v64_v28 = vld [vmem:[#allocation5] sm:$0xff] }
  0x2f   :  { %360 = vmatpush3.msra.mxu0 %v75_v5  ;;  %394 = vmatprep.subr.mxu1 %v168_v11  ;;  %v63_v29 = vld [vmem:[#allocation2 + $0x8] sm:$0xff]  ;;  %v159_v30 = vld [vmem:[#allocation7 + $0x10] sm:$0xff]  ;;  %v158_v31 = vld [vmem:[#allocation7 + $0x8] sm:$0xff] }
  0x30   :  { %361 = vmatprep.subr.mxu0 %v74_v8  ;;  %395 = vmatpush3.msra.mxu1 %v168_v11  ;;  %v157_v32 = vld [vmem:[#allocation7] sm:$0xff]  ;;  %v62_v37 = vld [vmem:[#allocation2] sm:$0xff] }
  0x31   :  { %362 = vmatpush3.msra.mxu0 %v74_v8  ;;  %396 = vmatprep.subr.mxu1 %v167_v13  ;;  %v313_v61 = vld [vmem:[%s586_s3] ss:$0 sm:$0xff] }
  0x32   :  { %363 = vmatprep.subr.mxu0 %v73_v10  ;;  %397 = vmatpush3.msra.mxu1 %v167_v13  ;;  %v314_v63 = vld [vmem:[%s587_s4] ss:$0 sm:$0xff] }
  0x33   :  { %364 = vmatpush3.msra.mxu0 %v73_v10  ;;  %398 = vmatprep.subr.mxu1 %v166_v15 }
  0x34   :  { %365 = vmatprep.subr.mxu0 %v72_v12  ;;  %399 = vmatpush3.msra.mxu1 %v166_v15 }
  0x35   :  { %366 = vmatpush3.msra.mxu0 %v72_v12  ;;  %400 = vmatprep.subr.mxu1 %v165_v17 }
  0x36   :  { %367 = vmatprep.subr.mxu0 %v71_v14  ;;  %401 = vmatpush3.msra.mxu1 %v165_v17 }
  0x37   :  { %368 = vmatpush3.msra.mxu0 %v71_v14  ;;  %402 = vmatprep.subr.mxu1 %v164_v19 }
  0x38   :  { %369 = vmatprep.subr.mxu0 %v70_v16  ;;  %403 = vmatpush3.msra.mxu1 %v164_v19 }
  0x39   :  { %370 = vmatpush3.msra.mxu0 %v70_v16  ;;  %404 = vmatprep.subr.mxu1 %v163_v21 }
  0x3a   :  { %371 = vmatprep.subr.mxu0 %v69_v18  ;;  %405 = vmatpush3.msra.mxu1 %v163_v21 }
  0x3b   :  { %372 = vmatpush3.msra.mxu0 %v69_v18  ;;  %406 = vmatprep.subr.mxu1 %v162_v23 }
  0x3c   :  { %373 = vmatprep.subr.mxu0 %v68_v20  ;;  %407 = vmatpush3.msra.mxu1 %v162_v23 }
  0x3d   :  { %374 = vmatpush3.msra.mxu0 %v68_v20  ;;  %408 = vmatprep.subr.mxu1 %v161_v25 }
  0x3e   :  { %375 = vmatprep.subr.mxu0 %v67_v22  ;;  %409 = vmatpush3.msra.mxu1 %v161_v25 }
  0x3f   :  { %376 = vmatpush3.msra.mxu0 %v67_v22  ;;  %410 = vmatprep.subr.mxu1 %v160_v27 }
  0x40   :  { %377 = vmatprep.subr.mxu0 %v66_v24  ;;  %411 = vmatpush3.msra.mxu1 %v160_v27 }
  0x41   :  { %378 = vmatpush3.msra.mxu0 %v66_v24  ;;  %412 = vmatprep.subr.mxu1 %v159_v30 }
  0x42   :  { %379 = vmatprep.subr.mxu0 %v65_v26  ;;  %413 = vmatpush3.msra.mxu1 %v159_v30 }
  0x43   :  { %380 = vmatpush3.msra.mxu0 %v65_v26  ;;  %414 = vmatprep.subr.mxu1 %v158_v31 }
  0x44   :  { %381 = vmatprep.subr.mxu0 %v64_v28  ;;  %415 = vmatpush3.msra.mxu1 %v158_v31 }
  0x45   :  { %382 = vmatpush3.msra.mxu0 %v64_v28  ;;  %416 = vmatprep.subr.mxu1 %v157_v32 }
  0x46   :  { %384 = vmatmul.mubr.f32.vlgmr.msra.gmra.mxu0 %v63_v29  ;;  %417 = vmatpush3.msra.mxu1 %v157_v32 }
  0x47   :  { %383 = vmatprep.mubr.f32.mxu0 %v62_v37 }
 0x106   :  { %v385_v33 = vpop.f32.mrf.mxu0 }
 0x107   :  { %v156_v36 = vmax.f32 %v385_v33, 0.0 }
 0x108   :  { %v146_v34 = vpop.f32.mrf.mxu0 }
 0x109   :  { %v155_v35 = vmax.f32 %v146_v34, 0.0 }
 0x10b   :  { %418 = vmatprep.mubr.f32.mxu1 %v155_v35 }
 0x10c   :  { %419 = vmatmul.mubr.f32.vlgmr.msra.gmra.mxu1 %v156_v36 }
 0x1cc   :  { %v420_v38 = vpop.f32.mrf.mxu1 }
 0x1cd   :  { %v245_v41 = vadd.f32 %v420_v38, %v63_v29 }
 0x1ce   :  { %v239_v39 = vpop.f32.mrf.mxu1 }
 0x1cf   :  { %v240_v40 = vadd.f32 %v239_v39, %v62_v37 }
 0x1d1   :  { %253 = vadd.xlane.f32.xlu0 %v240_v40 }
 0x1d5   :  { %255 = vadd.xlane.f32.xlu0 %v245_v41 }
 0x25a   :  { %v254_v44 = vpop.xlane.xlu0 %253 }
 0x25b   :  { %v257_v45 = vmul.f32 0.03125, %v254_v44 }
 0x25d   :  { %v259_v46 = vsub.f32 %v240_v40, %v257_v45 }
 0x25e   :  { %v256_v47 = vpop.xlane.xlu0 %255 }
 0x25f   :  { %v258_v48 = vmul.f32 0.03125, %v256_v47  ;;  %v261_v49 = vsel %vm252_vm0, %v259_v46, 0.0 }
 0x260   :  { %v263_v50 = vmul.f32 %v261_v49, %v261_v49 }
 0x261   :  { %v260_v51 = vsub.f32 %v245_v41, %v258_v48 }
 0x262   :  { %265 = vadd.xlane.f32.xlu1 %v263_v50 }
 0x263   :  { %v262_v52 = vsel %vm252_vm0, %v260_v51, 0.0 }
 0x264   :  { %v264_v53 = vmul.f32 %v262_v52, %v262_v52 }
 0x266   :  { %267 = vadd.xlane.f32.xlu1 %v264_v53 }
 0x2eb   :  { %v266_v54 = vpop.xlane.xlu1 %265 }
 0x2ec   :  { %v269_v55 = vmul.f32 0.03125, %v266_v54 }
 0x2ee   :  { %v271_v56 = vadd.f32 1e-05, %v269_v55 }
 0x2ef   :  { %v268_v57 = vpop.xlane.xlu1 %267 }
 0x2f0   :  { %427 = vrsqrt.f32 %v271_v56  ;;  %v270_v58 = vmul.f32 0.03125, %v268_v57 }
 0x2f2   :  { %v272_v59 = vadd.f32 1e-05, %v270_v58 }
 0x2f4   :  { %429 = vrsqrt.f32 %v272_v59 }
 0x2fd   :  { %v428_v60 = vpop.eup %427 }
 0x2fe   :  { %v275_v62 = vmul.f32 %v428_v60, %v259_v46 }
 0x300   :  { %v283_v0 = vmul.f32 %v313_v61, %v275_v62 }
 0x301   :  { %v430_v1 = vpop.eup %429 }
 0x302   :  { %v276_v2 = vmul.f32 %v430_v1, %v260_v51  ;;  %v291_v3 = vadd.f32 %v314_v63, %v283_v0 }
 0x304   :  { %v284_v4 = vmul.f32 %v313_v61, %v276_v2  ;;  %293 = vst [vmem:[#allocation8] sm:$0xff] %v291_v3 }
 0x306   :  { %v292_v5 = vadd.f32 %v314_v63, %v284_v4 }
 0x308   :  { %294 = vst [vmem:[#allocation8 + $0x8] sm:$0xff] %v292_v5 }
 0x309   :  { %502 = shalt.err (!%p499_p5)
}
 0x30a   :  { %306 = dma.vmem_to_hbm [thread:$0]  %s301_s12, 256, %s588_s5, [#allocation4], %s519_s23, %s519_s23, %s520_s24  }
 0x30b   :  { %515 = dma.done.wait [#allocation4], 256  }
 0x30c   :  { %516 = vsyncadd [#allocation4], 4294967040 }
 0x30d   :  { %310 = vsyncpa [#allocation3], 1 }
 0x30e   :  { %311 = vsyncpa [#allocation6], 1 }
 0x30f   :  { %312 = vsyncpa [#allocation4], 1 }

</bundles_post_ra>
